<compile_context>
chip_gen: v7x
topology: tpu7x:2x2x1
jax: 0.10.0
libtpu: 0.0.40
codegen_flags: <defaults>
</compile_context>

<pallas_src>
import jax
import jax.numpy as jnp
from jax.experimental import pallas as pl
from jax.experimental.pallas import tpu as pltpu

HIDDEN = 128
PAD_ACTIONS = 128     # lane-dense output width (real num_actions = 3)
NEG_PAD = -1e30       # bias for padded action lanes -> they can never win argmax


def _round_up(n, m):
    return -(-n // m) * m


def _mlp_body(x, w1_ref, b1_ref, w2_ref, b2_ref, w3_ref, b3_ref):
    """Shared 3-layer MLP math. x: (Bt, num_inputs) f32 -> (Bt, 128) f32 Q slab."""
    # ---- Layer 1 on the VPU: K = num_inputs (=2) is far too small for the MXU.
    h1 = b1_ref[...]                                   # (1, H) f32, broadcasts over rows
    for i in range(w1_ref.shape[0]):                   # static tiny loop (num_inputs = 2)
        h1 = h1 + x[:, i:i + 1] * w1_ref[i:i + 1, :]
    h1 = jnp.maximum(h1, 0.0)                          # ReLU, f32 on VPU

    # ---- Layers 2/3: bf16 MXU inputs, f32 accumulation (v5e has no bf16 VALU).
    # TODO(synk): if bundle dumps ever show vld/vst spill saturation at large
    # tiles, stage h1/h2 through explicit VMEM scratch instead of vregs.
    h2 = jnp.dot(h1.astype(jnp.bfloat16), w2_ref[...],
                 preferred_element_type=jnp.float32) + b2_ref[...]
    h2 = jnp.maximum(h2, 0.0)
    q = jnp.dot(h2.astype(jnp.bfloat16), w3_ref[...],
                preferred_element_type=jnp.float32) + b3_ref[...]
    return q                                            # (Bt, 128) f32, pad lanes ~ NEG_PAD


def make_dqn_kernel(batch_tile=None):
    """Q-slab kernel. batch_tile=None -> un-gridded (whole x); else gridded, x is
    resident and rows are sliced in-kernel (avoids a lane-sparse per-step DMA)."""
    def kernel(x_ref, w1_ref, b1_ref, w2_ref, b2_ref, w3_ref, b3_ref, q_ref):
        if batch_tile is None:
            x = x_ref[...]
        else:
            row0 = pl.multiple_of(pl.program_id(0) * batch_tile, batch_tile)
            x = x_ref[pl.ds(row0, batch_tile), :]
        q = _mlp_body(x, w1_ref, b1_ref, w2_ref, b2_ref, w3_ref, b3_ref)
        q_ref[...] = q.astype(q_ref.dtype)
    return kernel


def dqn_act_kernel(x_ref, w1_ref, b1_ref, w2_ref, b2_ref, w3_ref, b3_ref, a_ref):
    """Fused greedy-action kernel for act(): forward + argmax in one call.
    Padded action lanes carry NEG_PAD so only real actions can win."""
    q = _mlp_body(x_ref[...], w1_ref, b1_ref, w2_ref, b2_ref, w3_ref, b3_ref)
    lane = jax.lax.broadcasted_iota(jnp.int32, q.shape, 1)          # (B, 128)
    m = jnp.max(q, axis=-1, keepdims=True)                          # (B, 1)
    first_max = jnp.min(jnp.where(q >= m, lane, jnp.int32(PAD_ACTIONS)),
                        axis=-1, keepdims=True)                     # (B, 1) int32
    a_ref[...] = first_max.astype(jnp.int32)


def _cost_estimate(B, num_inputs, n_pad, arrays, out_bytes):
    flops = 2 * B * (num_inputs * HIDDEN + HIDDEN * HIDDEN + HIDDEN * n_pad)
    bytes_accessed = int(sum(int(a.nbytes) for a in arrays) + out_bytes)
    return pl.CostEstimate(flops=int(flops), transcendentals=0,
                           bytes_accessed=bytes_accessed)


def dqn_q_padded(x, params, *, max_resident_rows=4096, max_tile_rows=4096):
    """Lane-dense (B_pad, 128) Q slab (padded action lanes == NEG_PAD).
    Returns (q_padded, original_B)."""
    w1, b1, w2, b2, w3, b3 = params
    B, num_inputs = x.shape
    n_pad = w3.shape[1]

    if B <= max_resident_rows:
        # Single un-gridded invocation: best on single-TC v5e/v6e (a grid is a
        # serial loop with ~0.35 us/step overhead on a <0.05 us/tile kernel) and
        # fine on v7x for act()/minibatch-sized B. Everything resident in VMEM
        # (at 4096 rows the output is only ~2 MiB, far under scoped limits).
        ce = _cost_estimate(B, num_inputs, n_pad, (x, *params), B * n_pad * 4)
        vmem = pl.BlockSpec(memory_space=pltpu.MemorySpace.VMEM)
        q = pl.pallas_call(
            make_dqn_kernel(None),
            out_shape=jax.ShapeDtypeStruct((B, n_pad), jnp.float32),
            in_specs=[vmem] * 7,
            out_specs=vmem,
            cost_estimate=ce,
        )(x, *params)
        return q, B

    # Large B: cdiv grid + wrapper-side row padding (keeps VMEM flat for any B).
    # Target ~2 big steps (one per TensorCore on v7x, "parallel" semantics),
    # capped at max_tile_rows so per-tile VMEM stays trivial on every gen.
    tile = min(max_tile_rows, _round_up(pl.cdiv(B, 2), 8))
    grid = pl.cdiv(B, tile)
    b_pad = grid * tile
    if b_pad != B:
        x = jnp.pad(x, ((0, b_pad - B), (0, 0)))
    ce = _cost_estimate(b_pad, num_inputs, n_pad, (x, *params), b_pad * n_pad * 4)
    full = lambda a: pl.BlockSpec(a.shape, lambda i: (0,) * a.ndim)
    q = pl.pallas_call(
        make_dqn_kernel(tile),
        out_shape=jax.ShapeDtypeStruct((b_pad, n_pad), jnp.float32),
        grid=(grid,),
        in_specs=[
            # x is only 8 bytes/row: keep it resident (same block every step)
            # and slice rows in-kernel instead of a lane-sparse per-step DMA.
            full(x),
            full(w1), full(b1), full(w2), full(b2), full(w3), full(b3),
        ],
        out_specs=pl.BlockSpec((tile, n_pad), lambda i: (i, 0)),
        compiler_params=pltpu.CompilerParams(dimension_semantics=("parallel",)),
        cost_estimate=ce,
    )(x, *params)
    return q, B


def dqn_forward(x, params, num_actions, **kw):
    """nn.Module.forward() semantics: (B, num_actions) Q-values.
    (The act() path below fuses argmax in-kernel and skips this slice.)"""
    q, B = dqn_q_padded(x, params, **kw)
    return q[:B, :num_actions]


def dqn_act(x, params):
    """Fused greedy-action path for act(): returns (B, 1) int32 actions directly
    from the kernel — no wrapper-side slice/argmax launches."""
    w1, b1, w2, b2, w3, b3 = params
    B, num_inputs = x.shape
    n_pad = w3.shape[1]
    ce = _cost_estimate(B, num_inputs, n_pad, (x, *params), B * 4)
    vmem = pl.BlockSpec(memory_space=pltpu.MemorySpace.VMEM)
    return pl.pallas_call(
        dqn_act_kernel,
        out_shape=jax.ShapeDtypeStruct((B, 1), jnp.int32),
        in_specs=[vmem] * 7,
        out_specs=vmem,
        cost_estimate=ce,
    )(x, *params)


def init_params(key, num_inputs, num_actions, hidden=HIDDEN, pad_actions=PAD_ACTIONS):
    """PyTorch-style nn.Linear init: U(-1/sqrt(fan_in), 1/sqrt(fan_in)).
    Layer-3 weight is zero-padded / bias NEG_PAD-padded to `pad_actions` columns
    for a lane-dense output; the two 128x128 weights are stored in bfloat16."""
    def uniform(k, shape, fan_in):
        bound = 1.0 / float(fan_in) ** 0.5
        return jax.random.uniform(k, shape, jnp.float32, -bound, bound)

    key, k1w, k1b, k2w, k2b, k3w, k3b = jax.random.split(key, 7)
    w1 = uniform(k1w, (num_inputs, hidden), num_inputs)
    b1 = uniform(k1b, (1, hidden), num_inputs)
    w2 = uniform(k2w, (hidden, hidden), hidden)
    b2 = uniform(k2b, (1, hidden), hidden)
    w3 = uniform(k3w, (hidden, num_actions), hidden)
    b3 = uniform(k3b, (1, num_actions), hidden)

    # Lane-dense padding: zero weight columns, NEG_PAD bias columns (argmax-safe).
    w3p = jnp.zeros((hidden, pad_actions), jnp.float32).at[:, :num_actions].set(w3)
    b3p = jnp.full((1, pad_actions), NEG_PAD, jnp.float32).at[:, :num_actions].set(b3)

    # bf16 weights for the MXU layers; biases & layer-1 weights stay f32.
    return (w1, b1, w2.astype(jnp.bfloat16), b2, w3p.astype(jnp.bfloat16), b3p)


def dqn_reference(x, params, num_actions):
    """Pure-JAX reference matching the kernel's numerics (f32 layer 1 on the VPU,
    bf16 MXU inputs with f32 accumulation for layers 2/3)."""
    w1, b1, w2, b2, w3, b3 = params
    h1 = jnp.maximum(jnp.sum(x[:, :, None] * w1[None, :, :], axis=1) + b1, 0.0)
    h2 = jnp.maximum(
        jnp.dot(h1.astype(jnp.bfloat16), w2, preferred_element_type=jnp.float32) + b2,
        0.0)
    q = jnp.dot(h2.astype(jnp.bfloat16), w3, preferred_element_type=jnp.float32) + b3
    return q[:, :num_actions]


if __name__ == "__main__":
    # MountainCar-v0: observation_space.shape[0] == 2, action_space.n == 3
    NUM_INPUTS = 2
    NUM_ACTIONS = 3

    key = jax.random.PRNGKey(0)
    key, kx_small, kx_big, kx_act = jax.random.split(key, 4)
    params = init_params(key, NUM_INPUTS, NUM_ACTIONS)

    # --- Small minibatch: single un-gridded, fully VMEM-resident invocation. ---
    x_small = jax.random.normal(kx_small, (8, NUM_INPUTS), jnp.float32)
    q_small = jax.block_until_ready(dqn_forward(x_small, params, NUM_ACTIONS))
    q_small_ref = dqn_reference(x_small, params, NUM_ACTIONS)
    assert q_small.shape == (8, NUM_ACTIONS)
    assert jnp.allclose(q_small, q_small_ref, atol=2e-3, rtol=2e-3), \
        "small-batch mismatch vs reference"

    # --- Non-tile-divisible batch forced onto the cdiv-padded parallel grid. ---
    x_big = jax.random.normal(kx_big, (200, NUM_INPUTS), jnp.float32)
    q_big = jax.block_until_ready(
        dqn_forward(x_big, params, NUM_ACTIONS,
                    max_resident_rows=64, max_tile_rows=64))
    q_big_ref = dqn_reference(x_big, params, NUM_ACTIONS)
    assert q_big.shape == (200, NUM_ACTIONS)
    assert jnp.allclose(q_big, q_big_ref, atol=2e-3, rtol=2e-3), \
        "gridded/padded batch mismatch vs reference"

    # --- act()-style fused greedy-action path (B = 1), argmax in-kernel. ---
    x_act = jax.random.normal(kx_act, (1, NUM_INPUTS), jnp.float32)
    a = jax.block_until_ready(dqn_act(x_act, params))
    a_ref = jnp.argmax(dqn_reference(x_act, params, NUM_ACTIONS), axis=-1)
    assert a.shape == (1, 1)
    assert int(a[0, 0]) == int(a_ref[0]), "fused argmax mismatch vs reference"

    # TODO(synk): epsilon-greedy host RNG, gym env stepping, replay buffer and the
    # training-step TD/Huber loss stay host/XLA-side; only the nn.Module forward
    # (Q-values) and the greedy-action argmax are fused Pallas kernels.
    print("KERNEL_OK")
</pallas_src>

<mosaic_0001>
module attributes {stable_mosaic.version = 11 : i64} {
  func.func @kernel(%arg0: memref<8x2xf32, #tpu.memory_space<vmem>>, %arg1: memref<2x128xf32, #tpu.memory_space<vmem>>, %arg2: memref<1x128xf32, #tpu.memory_space<vmem>>, %arg3: memref<128x128xbf16, #tpu.memory_space<vmem>>, %arg4: memref<1x128xf32, #tpu.memory_space<vmem>>, %arg5: memref<128x128xbf16, #tpu.memory_space<vmem>>, %arg6: memref<1x128xf32, #tpu.memory_space<vmem>>, %arg7: memref<8x128xf32, #tpu.memory_space<vmem>>) attributes {dimension_semantics = [], scalar_prefetch = 0 : i64, scratch_operands = 0 : i64, tpu.core_type = #tpu.core_type<tc>} {
    %c0 = arith.constant 0 : index
    %c0_0 = arith.constant 0 : index
    %0 = vector.load %arg0[%c0, %c0_0] : memref<8x2xf32, #tpu.memory_space<vmem>>, vector<8x2xf32>
    %c0_1 = arith.constant 0 : index
    %c0_2 = arith.constant 0 : index
    %1 = vector.load %arg2[%c0_1, %c0_2] : memref<1x128xf32, #tpu.memory_space<vmem>>, vector<1x128xf32>
    %2 = vector.extract_strided_slice %0 {offsets = [0, 0], sizes = [8, 1], strides = [1, 1]} : vector<8x2xf32> to vector<8x1xf32>
    %c0_3 = arith.constant 0 : index
    %c0_4 = arith.constant 0 : index
    %3 = vector.load %arg1[%c0_3, %c0_4] : memref<2x128xf32, #tpu.memory_space<vmem>>, vector<1x128xf32>
    %4 = vector.broadcast %2 : vector<8x1xf32> to vector<8x128xf32>
    %5 = vector.broadcast %3 : vector<1x128xf32> to vector<8x128xf32>
    %6 = arith.mulf %4, %5 : vector<8x128xf32>
    %7 = vector.broadcast %1 : vector<1x128xf32> to vector<8x128xf32>
    %8 = arith.addf %7, %6 : vector<8x128xf32>
    %9 = vector.extract_strided_slice %0 {offsets = [0, 1], sizes = [8, 1], strides = [1, 1]} : vector<8x2xf32> to vector<8x1xf32>
    %c1 = arith.constant 1 : index
    %c0_5 = arith.constant 0 : index
    %10 = vector.load %arg1[%c1, %c0_5] : memref<2x128xf32, #tpu.memory_space<vmem>>, vector<1x128xf32>
    %11 = vector.broadcast %9 : vector<8x1xf32> to vector<8x128xf32>
    %12 = vector.broadcast %10 : vector<1x128xf32> to vector<8x128xf32>
    %13 = arith.mulf %11, %12 : vector<8x128xf32>
    %14 = arith.addf %8, %13 : vector<8x128xf32>
    %cst = arith.constant 0.000000e+00 : f32
    %15 = vector.broadcast %cst : f32 to vector<8x128xf32>
    %16 = arith.maximumf %14, %15 : vector<8x128xf32>
    %17 = arith.truncf %16 : vector<8x128xf32> to vector<8x128xbf16>
    %c0_6 = arith.constant 0 : index
    %c0_7 = arith.constant 0 : index
    %18 = vector.load %arg3[%c0_6, %c0_7] : memref<128x128xbf16, #tpu.memory_space<vmem>>, vector<128x128xbf16>
    %cst_8 = arith.constant dense<0.000000e+00> : vector<8x128xf32>
    %19 = tpu.matmul %17, %18, %cst_8 {dimension_numbers = #tpu.dot_dimension_numbers<[1], [0], [0], [1], [0, 0, 1, 1], [], []>} : vector<8x128xbf16>, vector<128x128xbf16>, vector<8x128xf32> -> vector<8x128xf32>
    %c0_9 = arith.constant 0 : index
    %c0_10 = arith.constant 0 : index
    %20 = vector.load %arg4[%c0_9, %c0_10] : memref<1x128xf32, #tpu.memory_space<vmem>>, vector<1x128xf32>
    %21 = vector.broadcast %20 : vector<1x128xf32> to vector<8x128xf32>
    %22 = arith.addf %19, %21 : vector<8x128xf32>
    %cst_11 = arith.constant 0.000000e+00 : f32
    %23 = vector.broadcast %cst_11 : f32 to vector<8x128xf32>
    %24 = arith.maximumf %22, %23 : vector<8x128xf32>
    %25 = arith.truncf %24 : vector<8x128xf32> to vector<8x128xbf16>
    %c0_12 = arith.constant 0 : index
    %c0_13 = arith.constant 0 : index
    %26 = vector.load %arg5[%c0_12, %c0_13] : memref<128x128xbf16, #tpu.memory_space<vmem>>, vector<128x128xbf16>
    %cst_14 = arith.constant dense<0.000000e+00> : vector<8x128xf32>
    %27 = tpu.matmul %25, %26, %cst_14 {dimension_numbers = #tpu.dot_dimension_numbers<[1], [0], [0], [1], [0, 0, 1, 1], [], []>} : vector<8x128xbf16>, vector<128x128xbf16>, vector<8x128xf32> -> vector<8x128xf32>
    %c0_15 = arith.constant 0 : index
    %c0_16 = arith.constant 0 : index
    %28 = vector.load %arg6[%c0_15, %c0_16] : memref<1x128xf32, #tpu.memory_space<vmem>>, vector<1x128xf32>
    %29 = vector.broadcast %28 : vector<1x128xf32> to vector<8x128xf32>
    %30 = arith.addf %27, %29 : vector<8x128xf32>
    %c0_17 = arith.constant 0 : index
    %c0_18 = arith.constant 0 : index
    %31 = vector.load %arg7[%c0_17, %c0_18] : memref<8x128xf32, #tpu.memory_space<vmem>>, vector<8x128xf32>
    tpu.vector_store %arg7[%c0_17, %c0_18], %30 {strides = array<i32>} : memref<8x128xf32, #tpu.memory_space<vmem>>, vector<8x128xf32>,
    return
  }
}

</mosaic_0001>

<bundles_post_ra>
// kernel: tpu_custom_call.1
= control target key start
LH: loop header
LB: loop body
LE: loop exit
PB: predicated region body
PF: predicated region fallthrough
CT: control target
= control target key end

     0   :  { %12 = vsyncpa [#allocation3], 0  ;;  %s629_s0 = inlined_call_operand.vmem [shape: f32[8,2], index: 0, kind: input, shape index: {}]   ;;  %s630_s1 = inlined_call_operand.vmem [shape: f32[2,128], index: 1, kind: input, shape index: {}]   ;;  %s631_s2 = inlined_call_operand.vmem [shape: f32[1,128], index: 2, kind: input, shape index: {}]   ;;  %s632_s3 = inlined_call_operand.hbm [shape: bf16[128,128], index: 3, kind: input, shape index: {}]   ;;  %s633_s4 = inlined_call_operand.vmem [shape: f32[1,128], index: 4, kind: input, shape index: {}]   ;;  %s634_s5 = inlined_call_operand.hbm [shape: bf16[128,128], index: 5, kind: input, shape index: {}]   ;;  %s635_s6 = inlined_call_operand.vmem [shape: f32[1,128], index: 6, kind: input, shape index: {}]   ;;  %s636_s7 = inlined_call_operand.hbm [shape: f32[8,128], index: 7, kind: output, shape index: {}]  }
   0x1   :  { %13 = vsyncpa [#allocation6], 0 }
   0x2   :  { %14 = vsyncpa [#allocation4], 0  ;;  %s508_s24 = smov [#allocation2]   ;;  %s436_s28 = scalar_lea.hbm %s632_s3, 1024 }
   0x3   :  { %s26_s25 = sshll.u32 %s508_s24, 4  ;;  %p437_p0 = scmp.ne.s32.totalorder %s632_s3, %s436_s28  ;;  %s27_s25 = int_to_ptr.vmem [resolvable:$true] %s26_s25 }
   0x4   :  { %p440_p1 = scmp.lt.u32.totalorder %s436_s28, %s632_s3 }
   0x6   :  { %p442_p2 = pnand %p440_p1, %p437_p0 }
   0x8   :  { %445 = shalt.err (!%p442_p2)
}
   0x9   :  { %s446_s10 = scalar_lea.vmem %s27_s25, 1024  ;;  %p451_p4 = scmp.lt.s32.totalorder %s27_s25, %s27_s25 }
   0xa   :  { %p447_p3 = scmp.ne.s32.totalorder %s27_s25, %s446_s10  ;;  %p452_p5 = scmp.lt.s32.totalorder %s446_s10, %s446_s10 }
   0xc   :  { %p453_p6 = por %p452_p5, %p451_p4 }
   0xe   :  { %p454_p7 = pnand %p453_p6, %p447_p3 }
  0x10   :  { %457 = shalt.err (!%p454_p7)
}
  0x11   :  { %s509_s11 = smov 64   ;;  %s510_s12 = smov 4  }
  0x12   :  { %32 = dma.hbm_to_vmem [thread:$0]  %s632_s3, 1024, %s27_s25, [#allocation3], %s509_s11, %s509_s11, %s510_s12  }
  0x13   :  { %s511_s15 = smov [#allocation5]   ;;  %s458_s19 = scalar_lea.hbm %s634_s5, 1024 }
  0x14   :  { %s40_s16 = sshll.u32 %s511_s15, 4  ;;  %p459_p8 = scmp.ne.s32.totalorder %s634_s5, %s458_s19  ;;  %s41_s16 = int_to_ptr.vmem [resolvable:$true] %s40_s16 }
  0x15   :  { %p462_p9 = scmp.lt.u32.totalorder %s458_s19, %s634_s5 }
  0x17   :  { %p464_p10 = pnand %p462_p9, %p459_p8 }
  0x19   :  { %467 = shalt.err (!%p464_p10)
}
  0x1a   :  { %s468_s24 = scalar_lea.vmem %s41_s16, 1024  ;;  %p473_p12 = scmp.lt.s32.totalorder %s41_s16, %s41_s16 }
  0x1b   :  { %p469_p11 = scmp.ne.s32.totalorder %s41_s16, %s468_s24  ;;  %p474_p13 = scmp.lt.s32.totalorder %s468_s24, %s468_s24 }
  0x1d   :  { %p475_p0 = por %p474_p13, %p473_p12 }
  0x1f   :  { %p476_p1 = pnand %p475_p0, %p469_p11 }
  0x21   :  { %479 = shalt.err (!%p476_p1)
}
  0x22   :  { %46 = dma.hbm_to_vmem [thread:$0]  %s634_s5, 1024, %s41_s16, [#allocation6], %s509_s11, %s509_s11, %s510_s12  }
  0x23   :  { %502 = dma.done.wait [#allocation3], 1024  }
  0x24   :  { %503 = vsyncadd [#allocation3], 4294966272 }
  0x25   :  { %504 = dma.done.wait [#allocation6], 1024  }
  0x26   :  { %505 = vsyncadd [#allocation6], 4294966272  ;;  %v512_v0 = vmov 0   ;;  %v513_v1 = vmov 0.0   ;;  %v56_v2 = vld [vmem:[%s629_s0] sm:$0xff]  ;;  %v421_v4 = vld [vmem:[#allocation2 + $0x8] sm:$0xff]  }
  0x27   :  { %418 = vset.pattern.permute.xlu0 %v512_v0  ;;  %369 = vmatprep.subr.bf16.mxu0 %v513_v1  ;;  %v420_v3 = vld [vmem:[#allocation2] sm:$0xff]   ;;  %v514_v5 = vmov 1   ;;  %v422_v6 = vld [vmem:[#allocation2 + $0x10] sm:$0xff]   ;;  %v423_v7 = vld [vmem:[#allocation2 + $0x18] sm:$0xff]   ;;  %vm515_vm0 = vmmov 0   ;;  %s516_s11 = smov [#allocation7]  }
  0x28   :  { %389 = vmatprep.subr.bf16.mxu1 %v513_v1  ;;  %61 = vperm.xlu0 %418, %v56_v2   ;;  %v428_v8 = vld [vmem:[#allocation5] sm:$0xff]   ;;  %v429_v10 = vld [vmem:[#allocation5 + $0x8] sm:$0xff]   ;;  %v430_v12 = vld [vmem:[#allocation5 + $0x10] sm:$0xff]   ;;  %s320_s12 = sshll.u32 %s516_s11, 4  ;;  %s321_s12 = int_to_ptr.vmem [resolvable:$true] %s320_s12 }
  0x29   :  { %370 = vmatpush3.bf16.msra.mxu0 %v420_v3  ;;  %385 = vmatprep.mubr.msk.bf16.mxu0 %vm515_vm0, %v513_v1  ;;  %v424_v9 = vld [vmem:[#allocation2 + $0x20] sm:$0xff]   ;;  %v425_v11 = vld [vmem:[#allocation2 + $0x28] sm:$0xff]   ;;  %v426_v13 = vld [vmem:[#allocation2 + $0x30] sm:$0xff]   ;;  %p485_p3 = scmp.lt.s32.totalorder %s321_s12, %s321_s12 }
  0x2a   :  { %371 = vmatprep.subr.bf16.mxu0 %v513_v1  ;;  %405 = vmatprep.mubr.msk.bf16.mxu1 %vm515_vm0, %v513_v1  ;;  %v431_v14 = vld [vmem:[#allocation5 + $0x18] sm:$0xff]   ;;  %v432_v16 = vld [vmem:[#allocation5 + $0x20] sm:$0xff]   ;;  %v433_v17 = vld [vmem:[#allocation5 + $0x28] sm:$0xff]  }
  0x2b   :  { %390 = vmatpush3.bf16.msra.mxu1 %v428_v8  ;;  %v427_v15 = vld [vmem:[#allocation2 + $0x38] sm:$0xff]   ;;  %v330_v18 = vld [vmem:[%s630_s1] ss:$0 sm:$0xff]  ;;  %v332_v22 = vld [vmem:[%s630_s1 + $0x1] ss:$0 sm:$0xff] }
  0x2c   :  { %419 = vset.pattern.permute.xlu0 %v514_v5  ;;  %391 = vmatprep.subr.bf16.mxu1 %v513_v1  ;;  %v331_v21 = vld [vmem:[%s631_s2] ss:$0 sm:$0xff]  ;;  %v434_v29 = vld [vmem:[#allocation5 + $0x30] sm:$0xff]   ;;  %v435_v30 = vld [vmem:[#allocation5 + $0x38] sm:$0xff]  }
  0x2d   :  { %78 = vperm.xlu0 %419, %v56_v2   ;;  %372 = vmatpush3.bf16.msra.mxu0 %v421_v4  ;;  %v333_v31 = vld [vmem:[%s633_s4] ss:$0 sm:$0xff]  ;;  %s480_s4 = scalar_lea.vmem %s321_s12, 128 }
  0x2e   :  { %373 = vmatprep.subr.bf16.mxu0 %v513_v1  ;;  %v342_v39 = vld [vmem:[%s635_s6] ss:$0 sm:$0xff]  ;;  %p481_p2 = scmp.ne.s32.totalorder %s321_s12, %s480_s4  ;;  %p486_p4 = scmp.lt.s32.totalorder %s480_s4, %s480_s4 }
  0x2f   :  { %392 = vmatpush3.bf16.msra.mxu1 %v429_v10 }
  0x30   :  { %393 = vmatprep.subr.bf16.mxu1 %v513_v1  ;;  %p487_p5 = por %p486_p4, %p485_p3 }
  0x31   :  { %374 = vmatpush3.bf16.msra.mxu0 %v422_v6 }
  0x32   :  { %375 = vmatprep.subr.bf16.mxu0 %v513_v1  ;;  %p488_p6 = pnand %p487_p5, %p481_p2 }
  0x33   :  { %394 = vmatpush3.bf16.msra.mxu1 %v430_v12 }
  0x34   :  { %395 = vmatprep.subr.bf16.mxu1 %v513_v1 }
  0x35   :  { %376 = vmatpush3.bf16.msra.mxu0 %v423_v7 }
  0x36   :  { %377 = vmatprep.subr.bf16.mxu0 %v513_v1 }
  0x37   :  { %396 = vmatpush3.bf16.msra.mxu1 %v431_v14 }
  0x38   :  { %397 = vmatprep.subr.bf16.mxu1 %v513_v1 }
  0x39   :  { %378 = vmatpush3.bf16.msra.mxu0 %v424_v9 }
  0x3a   :  { %379 = vmatprep.subr.bf16.mxu0 %v513_v1 }
  0x3b   :  { %398 = vmatpush3.bf16.msra.mxu1 %v432_v16 }
  0x3c   :  { %399 = vmatprep.subr.bf16.mxu1 %v513_v1 }
  0x3d   :  { %380 = vmatpush3.bf16.msra.mxu0 %v425_v11 }
  0x3e   :  { %381 = vmatprep.subr.bf16.mxu0 %v513_v1 }
  0x3f   :  { %400 = vmatpush3.bf16.msra.mxu1 %v433_v17 }
  0x40   :  { %401 = vmatprep.subr.bf16.mxu1 %v513_v1 }
  0x41   :  { %382 = vmatpush3.bf16.msra.mxu0 %v426_v13 }
  0x42   :  { %383 = vmatprep.subr.bf16.mxu0 %v513_v1 }
  0x43   :  { %402 = vmatpush3.bf16.msra.mxu1 %v434_v29 }
  0x44   :  { %403 = vmatprep.subr.bf16.mxu1 %v513_v1 }
  0x45   :  { %384 = vmatpush3.bf16.msra.mxu0 %v427_v15 }
  0x47   :  { %404 = vmatpush3.bf16.msra.mxu1 %v435_v30 }
  0xa7   :  { %v62_v19 = vpop.permute.xlu0 %61 }
  0xa8   :  { %v68_v20 = vmul.f32 %v330_v18, %v62_v19 }
  0xaa   :  { %v75_v24 = vadd.f32 %v331_v21, %v68_v20 }
  0xac   :  { %v79_v23 = vpop.permute.xlu0 %78 }
  0xad   :  { %v85_v25 = vmul.f32 %v332_v22, %v79_v23 }
  0xaf   :  { %v86_v26 = vadd.f32 %v85_v25, %v75_v24 }
  0xb1   :  { %v87_v27 = vmax.f32 %v86_v26, 0.0 }
  0xb3   :  { %v88_v28 = vpack.c.bf16 %v87_v27, %v87_v27 }
  0xb5   :  { %386 = vmatmul.mubr.bf16.vlgmr.msra.gmra.mrb[0].mxu0 %v88_v28 }
 0x188   :  { %v194_v32 = vpop.f32.mrb[0].mxu0 }
 0x189   :  { %v195_v33 = vadd.f32 %v333_v31, %v194_v32  ;;  %v387_v34 = vpop.f32.mrb[1].mxu0 }
 0x18a   :  { %v197_v35 = vpop.f32.mrb[2].mxu0 }
 0x18b   :  { %v200_v36 = vmax.f32 %v195_v33, 0.0  ;;  %v388_v37 = vpop.f32.mrb[3].mxu0 }
 0x18d   :  { %v201_v38 = vpack.c.bf16 %v200_v36, %v200_v36 }
 0x18f   :  { %406 = vmatmul.mubr.bf16.vlgmr.msra.gmra.mrb[0].mxu1 %v201_v38 }
 0x262   :  { %v307_v40 = vpop.f32.mrb[0].mxu1 }
 0x263   :  { %v308_v41 = vadd.f32 %v342_v39, %v307_v40  ;;  %v407_v42 = vpop.f32.mrb[1].mxu1 }
 0x264   :  { %v310_v43 = vpop.f32.mrb[2].mxu1 }
 0x265   :  { %313 = vst [vmem:[#allocation7] sm:$0xff] %v308_v41  ;;  %v408_v44 = vpop.f32.mrb[3].mxu1 }
 0x266   :  { %491 = shalt.err (!%p488_p6)
}
 0x267   :  { %s492_s6 = scalar_lea.hbm %s636_s7, 128 }
 0x268   :  { %p493_p7 = scmp.ne.s32.totalorder %s636_s7, %s492_s6  ;;  %p496_p8 = scmp.lt.u32.totalorder %s492_s6, %s636_s7 }
 0x26a   :  { %p498_p9 = pnand %p496_p8, %p493_p7 }
 0x26c   :  { %501 = shalt.err (!%p498_p9)
}
 0x26d   :  { %323 = dma.vmem_to_hbm [thread:$0]  %s321_s12, 128, %s636_s7, [#allocation4]  }
 0x26e   :  { %506 = dma.done.wait [#allocation4], 128  }
 0x26f   :  { %507 = vsyncadd [#allocation4], 4294967168 }
 0x270   :  { %327 = vsyncpa [#allocation3], 1 }
 0x271   :  { %328 = vsyncpa [#allocation6], 1 }
 0x272   :  { %329 = vsyncpa [#allocation4], 1 }

</bundles_post_ra>
